<compile_context>
chip_gen: v5e
topology: v5e:2x2
jax: 0.10.0
libtpu: 0.0.40
codegen_flags: <defaults>
</compile_context>

<pallas_src>
import functools

import jax
import jax.numpy as jnp
from jax.experimental import pallas as pl
from jax.experimental.pallas import tpu as pltpu


def _round_up(x, m):
    return ((x + m - 1) // m) * m


def _critic_kernel(state_ref, action_ref, ws_ref, wa_ref, b0_ref,
                   wh_ref, bh_ref, lng_ref, lnb_ref, wo_ref, bo_ref,
                   out_ref, *, num_hidden_layers, hidden_dim, use_ln,
                   ln_eps, matmul_dtype):
    """Fused MLP forward for one batch tile.

    state_ref : (TB, state_dim)      action_ref : (TB, action_dim)
    ws_ref    : (state_dim, Hp)      wa_ref     : (action_dim, Hp)     (matmul dtype)
    b0_ref    : (1, Hp)  f32
    wh_ref    : (Lk, Hp, Hp) (matmul dtype)   bh_ref : (Lk, 1, Hp) f32
    lng_ref   : (Lk, 1, Hp) f32 (LN gamma)    lnb_ref: (Lk, 1, Hp) f32 (LN beta)
    wo_ref    : (1, Hp) f32          bo_ref     : (1, 1) f32
    out_ref   : (TB, 128) f32  (lane-dense; column 0 holds q)
    """
    md = matmul_dtype

    # First Linear (split across the concat boundary) + ReLU. f32 accumulation on MXU.
    h = (jnp.dot(state_ref[...].astype(md), ws_ref[...],
                 preferred_element_type=jnp.float32)
         + jnp.dot(action_ref[...].astype(md), wa_ref[...],
                   preferred_element_type=jnp.float32)
         + b0_ref[...])
    h = jnp.maximum(h, 0.0)

    inv_h = 1.0 / float(hidden_dim)
    for l in range(num_hidden_layers):
        h = jnp.dot(h.astype(md), wh_ref[l],
                    preferred_element_type=jnp.float32) + bh_ref[l]
        h = jnp.maximum(h, 0.0)
        if use_ln:
            # Fused one-pass statistics. Padded lanes of h are exactly zero here
            # (padded weight columns / biases are zero), so plain lane sums divided
            # by the TRUE hidden width give correct mean/variance.
            s1 = jnp.sum(h, axis=-1, keepdims=True)
            s2 = jnp.sum(h * h, axis=-1, keepdims=True)
            mu = s1 * inv_h
            var = s2 * inv_h - mu * mu
            hn = (h - mu) * jax.lax.rsqrt(var + ln_eps)
            # gamma/beta are zero in padded lanes -> padded lanes return to exactly 0.
            h = hn * lng_ref[l] + lnb_ref[l]

    # Final Linear H->1 as VPU multiply + lane reduction (avoids a width-1 MXU matmul).
    q = jnp.sum(h * wo_ref[...], axis=-1, keepdims=True) + bo_ref[...]
    # Lane-dense store; wrapper keeps column 0.
    out_ref[...] = jnp.broadcast_to(q, out_ref.shape).astype(out_ref.dtype)


def critic_forward(state, action, packed_params, *, num_hidden_layers,
                   hidden_layer_dim, use_ln=False, ln_eps=1e-5,
                   block_b=256, matmul_dtype=jnp.bfloat16):
    """Wrapper: batch tiling + pallas_call. Returns q of shape (B, 1), f32."""
    ws, wa, b0, wh, bh, lng, lnb, wo, bo = packed_params
    B, state_dim = state.shape
    action_dim = action.shape[1]
    hp = ws.shape[1]

    # Batch tile: multiple of 8 sublanes, modest size (kernel is tiny / latency bound).
    tb = _round_up(min(block_b, _round_up(B, 8)), 8)
    b_pad = _round_up(B, tb)
    if b_pad != B:
        state = jnp.pad(state, ((0, b_pad - B), (0, 0)))
        action = jnp.pad(action, ((0, b_pad - B), (0, 0)))
    grid = (b_pad // tb,)

    kernel = functools.partial(
        _critic_kernel, num_hidden_layers=num_hidden_layers,
        hidden_dim=hidden_layer_dim, use_ln=use_ln, ln_eps=ln_eps,
        matmul_dtype=matmul_dtype)

    def resident(arr):
        # Full-array block, constant index map -> weight stays VMEM-resident.
        nd = arr.ndim
        return pl.BlockSpec(arr.shape, lambda i, _nd=nd: (0,) * _nd)

    # Advisory cost estimate so XLA can overlap this small kernel with neighbors.
    din = state_dim + action_dim
    w_item = jnp.dtype(matmul_dtype).itemsize
    flops = 2 * b_pad * (din * hp + num_hidden_layers * hp * hp + hp)
    weight_bytes = ((din * hp + num_hidden_layers * hp * hp) * w_item
                    + (3 * num_hidden_layers + 2) * hp * 4 + 4)
    bytes_accessed = 4 * b_pad * (din + 128) + weight_bytes
    cost = pl.CostEstimate(flops=flops,
                           transcendentals=b_pad * num_hidden_layers if use_ln else 0,
                           bytes_accessed=bytes_accessed)

    out = pl.pallas_call(
        kernel,
        out_shape=jax.ShapeDtypeStruct((b_pad, 128), jnp.float32),
        grid=grid,
        in_specs=[
            pl.BlockSpec((tb, state_dim), lambda i: (i, 0)),
            pl.BlockSpec((tb, action_dim), lambda i: (i, 0)),
            resident(ws), resident(wa), resident(b0),
            resident(wh), resident(bh),
            resident(lng), resident(lnb),
            resident(wo), resident(bo),
        ],
        out_specs=pl.BlockSpec((tb, 128), lambda i: (i, 0)),
        compiler_params=pltpu.CompilerParams(dimension_semantics=("parallel",)),
        cost_estimate=cost,
    )(state, action, ws, wa, b0, wh, bh, lng, lnb, wo, bo)

    return out[:B, :1]


def init_critic_params(key, state_dim, action_dim, num_hidden_layers, hidden_layer_dim):
    """Logical (unpadded) f32 params, PyTorch nn.Linear-style uniform init.
    LayerNorm affine initialized to PyTorch defaults (gamma=1, beta=0)."""
    din = state_dim + action_dim
    H = hidden_layer_dim
    L = num_hidden_layers
    ks = jax.random.split(key, 6)

    def lin(kw, kb, fan_in, wshape, bshape):
        bound = 1.0 / (fan_in ** 0.5)
        w = jax.random.uniform(kw, wshape, jnp.float32, -bound, bound)
        b = jax.random.uniform(kb, bshape, jnp.float32, -bound, bound)
        return w, b

    w0, b0 = lin(ks[0], ks[1], din, (din, H), (H,))
    wh, bh = lin(ks[2], ks[3], H, (L, H, H), (L, H))
    wo, bo = lin(ks[4], ks[5], H, (H, 1), (1,))
    ln_g = jnp.ones((L, H), jnp.float32)
    ln_b = jnp.zeros((L, H), jnp.float32)
    return (w0, b0, wh, bh, wo, bo, ln_g, ln_b)


def pack_critic_params(params, *, state_dim, matmul_dtype=jnp.bfloat16):
    """Split the first weight at the concat boundary, zero-pad hidden width to a
    multiple of 128 lanes, and cast matmul weights to the MXU dtype."""
    w0, b0, wh, bh, wo, bo, ln_g, ln_b = params
    din, H = w0.shape
    L = wh.shape[0]
    Lk = max(L, 1)                    # keep a non-empty stacked array even if L == 0
    Hp = _round_up(H, 128)
    md = matmul_dtype

    ws = jnp.zeros((state_dim, Hp), jnp.float32).at[:, :H].set(w0[:state_dim]).astype(md)
    wa = jnp.zeros((din - state_dim, Hp), jnp.float32).at[:, :H].set(w0[state_dim:]).astype(md)
    b0p = jnp.zeros((1, Hp), jnp.float32).at[0, :H].set(b0)
    whp = jnp.zeros((Lk, Hp, Hp), jnp.float32).at[:L, :H, :H].set(wh).astype(md)
    bhp = jnp.zeros((Lk, 1, Hp), jnp.float32).at[:L, 0, :H].set(bh)
    lngp = jnp.zeros((Lk, 1, Hp), jnp.float32).at[:L, 0, :H].set(ln_g)
    lnbp = jnp.zeros((Lk, 1, Hp), jnp.float32).at[:L, 0, :H].set(ln_b)
    wop = jnp.zeros((1, Hp), jnp.float32).at[0, :H].set(wo[:, 0])
    bop = bo.reshape(1, 1).astype(jnp.float32)
    return (ws, wa, b0p, whp, bhp, lngp, lnbp, wop, bop)


def critic_forward_ref(state, action, params, *, use_ln=False, ln_eps=1e-5,
                       matmul_dtype=jnp.bfloat16):
    """Pure-JAX reference (mirrors the bf16 matmul casts, f32 accumulation)."""
    w0, b0, wh, bh, wo, bo, ln_g, ln_b = params
    md = matmul_dtype
    sa = jnp.concatenate([state, action], axis=1)
    h = jnp.dot(sa.astype(md), w0.astype(md),
                preferred_element_type=jnp.float32) + b0
    h = jnp.maximum(h, 0.0)
    for l in range(wh.shape[0]):
        h = jnp.dot(h.astype(md), wh[l].astype(md),
                    preferred_element_type=jnp.float32) + bh[l]
        h = jnp.maximum(h, 0.0)
        if use_ln:
            mu = jnp.mean(h, axis=-1, keepdims=True)
            var = jnp.mean((h - mu) ** 2, axis=-1, keepdims=True)
            h = (h - mu) * jax.lax.rsqrt(var + ln_eps) * ln_g[l] + ln_b[l]
    return jnp.dot(h, wo) + bo


if __name__ == "__main__":
    STATE_DIM, ACTION_DIM = 12, 4
    NUM_HIDDEN_LAYERS, HIDDEN_DIM = 2, 32

    key = jax.random.PRNGKey(0)
    k_s, k_a, k_p = jax.random.split(key, 3)
    params = init_critic_params(k_p, STATE_DIM, ACTION_DIM,
                                NUM_HIDDEN_LAYERS, HIDDEN_DIM)
    packed = pack_critic_params(params, state_dim=STATE_DIM)

    # (batch, use_ln) configs: exercises LN on/off and the batch-padding path.
    for B, use_ln in ((8, False), (8, True), (50, True)):
        state = jax.random.normal(k_s, (B, STATE_DIM), jnp.float32)
        action = jax.random.normal(k_a, (B, ACTION_DIM), jnp.float32)

        q = critic_forward(state, action, packed,
                           num_hidden_layers=NUM_HIDDEN_LAYERS,
                           hidden_layer_dim=HIDDEN_DIM, use_ln=use_ln)
        q = jax.block_until_ready(q)

        q_ref = critic_forward_ref(state, action, params, use_ln=use_ln)
        assert q.shape == (B, 1), q.shape
        max_err = float(jnp.max(jnp.abs(q - q_ref)))
        assert jnp.allclose(q, q_ref, atol=2e-3, rtol=2e-3), (
            f"mismatch vs JAX reference (B={B}, use_ln={use_ln}): max_abs_err={max_err}")

    print("KERNEL_OK")
</pallas_src>

<mosaic_0001>
module attributes {stable_mosaic.version = 11 : i64} {
  func.func @_critic_kernel(%arg0: i32, %arg1: memref<8x12xf32, #tpu.memory_space<vmem>>, %arg2: memref<8x4xf32, #tpu.memory_space<vmem>>, %arg3: memref<12x128xbf16, #tpu.memory_space<vmem>>, %arg4: memref<4x128xbf16, #tpu.memory_space<vmem>>, %arg5: memref<1x128xf32, #tpu.memory_space<vmem>>, %arg6: memref<2x128x128xbf16, #tpu.memory_space<vmem>>, %arg7: memref<2x1x128xf32, #tpu.memory_space<vmem>>, %arg8: memref<2x1x128xf32, #tpu.memory_space<vmem>>, %arg9: memref<2x1x128xf32, #tpu.memory_space<vmem>>, %arg10: memref<1x128xf32, #tpu.memory_space<vmem>>, %arg11: memref<1x1xf32, #tpu.memory_space<vmem>>, %arg12: memref<8x128xf32, #tpu.memory_space<vmem>>) attributes {dimension_semantics = [#tpu.dimension_semantics<parallel>], iteration_bounds = array<i64: 1>, scalar_prefetch = 0 : i64, scratch_operands = 0 : i64, tpu.core_type = #tpu.core_type<tc>, window_params = [{transform_indices = @transform_0, window_bounds = array<i64: 8, 12>}, {transform_indices = @transform_1, window_bounds = array<i64: 8, 4>}, {pipeline_mode = #tpu.pipeline_mode<synchronous>, transform_indices = @transform_2, window_bounds = array<i64: 12, 128>}, {pipeline_mode = #tpu.pipeline_mode<synchronous>, transform_indices = @transform_3, window_bounds = array<i64: 4, 128>}, {pipeline_mode = #tpu.pipeline_mode<synchronous>, transform_indices = @transform_4, window_bounds = array<i64: 1, 128>}, {pipeline_mode = #tpu.pipeline_mode<synchronous>, transform_indices = @transform_5, window_bounds = array<i64: 2, 128, 128>}, {pipeline_mode = #tpu.pipeline_mode<synchronous>, transform_indices = @transform_6, window_bounds = array<i64: 2, 1, 128>}, {pipeline_mode = #tpu.pipeline_mode<synchronous>, transform_indices = @transform_7, window_bounds = array<i64: 2, 1, 128>}, {pipeline_mode = #tpu.pipeline_mode<synchronous>, transform_indices = @transform_8, window_bounds = array<i64: 2, 1, 128>}, {pipeline_mode = #tpu.pipeline_mode<synchronous>, transform_indices = @transform_9, window_bounds = array<i64: 1, 128>}, {pipeline_mode = #tpu.pipeline_mode<synchronous>, transform_indices = @transform_10, window_bounds = array<i64: 1, 1>}, {transform_indices = @transform_11, window_bounds = array<i64: 8, 128>}]} {
    %c0 = arith.constant 0 : index
    %c0_0 = arith.constant 0 : index
    %0 = vector.load %arg1[%c0, %c0_0] : memref<8x12xf32, #tpu.memory_space<vmem>>, vector<8x12xf32>
    %1 = arith.truncf %0 : vector<8x12xf32> to vector<8x12xbf16>
    %c0_1 = arith.constant 0 : index
    %c0_2 = arith.constant 0 : index
    %2 = vector.load %arg3[%c0_1, %c0_2] : memref<12x128xbf16, #tpu.memory_space<vmem>>, vector<12x128xbf16>
    %cst = arith.constant dense<0.000000e+00> : vector<8x128xf32>
    %3 = tpu.matmul %1, %2, %cst {dimension_numbers = #tpu.dot_dimension_numbers<[1], [0], [0], [1], [0, 0, 1, 1], [], []>} : vector<8x12xbf16>, vector<12x128xbf16>, vector<8x128xf32> -> vector<8x128xf32>
    %c0_3 = arith.constant 0 : index
    %c0_4 = arith.constant 0 : index
    %4 = vector.load %arg2[%c0_3, %c0_4] : memref<8x4xf32, #tpu.memory_space<vmem>>, vector<8x4xf32>
    %5 = arith.truncf %4 : vector<8x4xf32> to vector<8x4xbf16>
    %c0_5 = arith.constant 0 : index
    %c0_6 = arith.constant 0 : index
    %6 = vector.load %arg4[%c0_5, %c0_6] : memref<4x128xbf16, #tpu.memory_space<vmem>>, vector<4x128xbf16>
    %cst_7 = arith.constant dense<0.000000e+00> : vector<8x128xf32>
    %7 = tpu.matmul %5, %6, %cst_7 {dimension_numbers = #tpu.dot_dimension_numbers<[1], [0], [0], [1], [0, 0, 1, 1], [], []>} : vector<8x4xbf16>, vector<4x128xbf16>, vector<8x128xf32> -> vector<8x128xf32>
    %8 = arith.addf %3, %7 : vector<8x128xf32>
    %c0_8 = arith.constant 0 : index
    %c0_9 = arith.constant 0 : index
    %9 = vector.load %arg5[%c0_8, %c0_9] : memref<1x128xf32, #tpu.memory_space<vmem>>, vector<1x128xf32>
    %10 = vector.broadcast %9 : vector<1x128xf32> to vector<8x128xf32>
    %11 = arith.addf %8, %10 : vector<8x128xf32>
    %cst_10 = arith.constant 0.000000e+00 : f32
    %12 = vector.broadcast %cst_10 : f32 to vector<8x128xf32>
    %13 = arith.maximumf %11, %12 : vector<8x128xf32>
    %14 = arith.truncf %13 : vector<8x128xf32> to vector<8x128xbf16>
    %c0_11 = arith.constant 0 : index
    %c0_12 = arith.constant 0 : index
    %c0_13 = arith.constant 0 : index
    %15 = vector.load %arg6[%c0_11, %c0_12, %c0_13] : memref<2x128x128xbf16, #tpu.memory_space<vmem>>, vector<1x128x128xbf16>
    %16 = vector.shape_cast %15 : vector<1x128x128xbf16> to vector<128x128xbf16>
    %cst_14 = arith.constant dense<0.000000e+00> : vector<8x128xf32>
    %17 = tpu.matmul %14, %16, %cst_14 {dimension_numbers = #tpu.dot_dimension_numbers<[1], [0], [0], [1], [0, 0, 1, 1], [], []>} : vector<8x128xbf16>, vector<128x128xbf16>, vector<8x128xf32> -> vector<8x128xf32>
    %c0_15 = arith.constant 0 : index
    %c0_16 = arith.constant 0 : index
    %c0_17 = arith.constant 0 : index
    %18 = vector.load %arg7[%c0_15, %c0_16, %c0_17] : memref<2x1x128xf32, #tpu.memory_space<vmem>>, vector<1x1x128xf32>
    %19 = vector.shape_cast %18 : vector<1x1x128xf32> to vector<1x128xf32>
    %20 = vector.broadcast %19 : vector<1x128xf32> to vector<8x128xf32>
    %21 = arith.addf %17, %20 : vector<8x128xf32>
    %cst_18 = arith.constant 0.000000e+00 : f32
    %22 = vector.broadcast %cst_18 : f32 to vector<8x128xf32>
    %23 = arith.maximumf %21, %22 : vector<8x128xf32>
    %24 = arith.truncf %23 : vector<8x128xf32> to vector<8x128xbf16>
    %c1 = arith.constant 1 : index
    %c0_19 = arith.constant 0 : index
    %c0_20 = arith.constant 0 : index
    %25 = vector.load %arg6[%c1, %c0_19, %c0_20] : memref<2x128x128xbf16, #tpu.memory_space<vmem>>, vector<1x128x128xbf16>
    %26 = vector.shape_cast %25 : vector<1x128x128xbf16> to vector<128x128xbf16>
    %cst_21 = arith.constant dense<0.000000e+00> : vector<8x128xf32>
    %27 = tpu.matmul %24, %26, %cst_21 {dimension_numbers = #tpu.dot_dimension_numbers<[1], [0], [0], [1], [0, 0, 1, 1], [], []>} : vector<8x128xbf16>, vector<128x128xbf16>, vector<8x128xf32> -> vector<8x128xf32>
    %c1_22 = arith.constant 1 : index
    %c0_23 = arith.constant 0 : index
    %c0_24 = arith.constant 0 : index
    %28 = vector.load %arg7[%c1_22, %c0_23, %c0_24] : memref<2x1x128xf32, #tpu.memory_space<vmem>>, vector<1x1x128xf32>
    %29 = vector.shape_cast %28 : vector<1x1x128xf32> to vector<1x128xf32>
    %30 = vector.broadcast %29 : vector<1x128xf32> to vector<8x128xf32>
    %31 = arith.addf %27, %30 : vector<8x128xf32>
    %cst_25 = arith.constant 0.000000e+00 : f32
    %32 = vector.broadcast %cst_25 : f32 to vector<8x128xf32>
    %33 = arith.maximumf %31, %32 : vector<8x128xf32>
    %c0_26 = arith.constant 0 : index
    %c0_27 = arith.constant 0 : index
    %34 = vector.load %arg10[%c0_26, %c0_27] : memref<1x128xf32, #tpu.memory_space<vmem>>, vector<1x128xf32>
    %35 = vector.broadcast %34 : vector<1x128xf32> to vector<8x128xf32>
    %36 = arith.mulf %33, %35 : vector<8x128xf32>
    %cst_28 = arith.constant dense<0.000000e+00> : vector<8xf32>
    %37 = vector.multi_reduction <add>, %36, %cst_28 [1] : vector<8x128xf32> to vector<8xf32>
    %38 = vector.shape_cast %37 : vector<8xf32> to vector<8x1xf32>
    %c0_29 = arith.constant 0 : index
    %c0_30 = arith.constant 0 : index
    %39 = vector.load %arg11[%c0_29, %c0_30] : memref<1x1xf32, #tpu.memory_space<vmem>>, vector<1x1xf32>
    %40 = vector.broadcast %39 : vector<1x1xf32> to vector<8x1xf32>
    %41 = arith.addf %38, %40 : vector<8x1xf32>
    %42 = vector.shape_cast %41 : vector<8x1xf32> to vector<8x1xf32>
    %43 = vector.broadcast %42 : vector<8x1xf32> to vector<8x128xf32>
    %c0_31 = arith.constant 0 : index
    %c0_32 = arith.constant 0 : index
    %44 = vector.load %arg12[%c0_31, %c0_32] : memref<8x128xf32, #tpu.memory_space<vmem>>, vector<8x128xf32>
    tpu.vector_store %arg12[%c0_31, %c0_32], %43 {strides = array<i32>} : memref<8x128xf32, #tpu.memory_space<vmem>>, vector<8x128xf32>,
    return
  }
  func.func @transform_0(%arg0: i32) -> (i32, i32) {
    %c0_i32 = arith.constant 0 : i32
    %c0_i32_0 = arith.constant 0 : i32
    return %arg0, %c0_i32 : i32, i32
  }
  func.func @transform_1(%arg0: i32) -> (i32, i32) {
    %c0_i32 = arith.constant 0 : i32
    %c0_i32_0 = arith.constant 0 : i32
    return %arg0, %c0_i32 : i32, i32
  }
  func.func @transform_2(%arg0: i32) -> (i32, i32) {
    %c0_i32 = arith.constant 0 : i32
    %c0_i32_0 = arith.constant 0 : i32
    %c0_i32_1 = arith.constant 0 : i32
    return %c0_i32, %c0_i32_0 : i32, i32
  }
  func.func @transform_3(%arg0: i32) -> (i32, i32) {
    %c0_i32 = arith.constant 0 : i32
    %c0_i32_0 = arith.constant 0 : i32
    %c0_i32_1 = arith.constant 0 : i32
    return %c0_i32, %c0_i32_0 : i32, i32
  }
  func.func @transform_4(%arg0: i32) -> (i32, i32) {
    %c0_i32 = arith.constant 0 : i32
    %c0_i32_0 = arith.constant 0 : i32
    %c0_i32_1 = arith.constant 0 : i32
    return %c0_i32, %c0_i32_0 : i32, i32
  }
  func.func @transform_5(%arg0: i32) -> (i32, i32, i32) {
    %c0_i32 = arith.constant 0 : i32
    %c0_i32_0 = arith.constant 0 : i32
    %c0_i32_1 = arith.constant 0 : i32
    %c0_i32_2 = arith.constant 0 : i32
    return %c0_i32, %c0_i32_0, %c0_i32_1 : i32, i32, i32
  }
  func.func @transform_6(%arg0: i32) -> (i32, i32, i32) {
    %c0_i32 = arith.constant 0 : i32
    %c0_i32_0 = arith.constant 0 : i32
    %c0_i32_1 = arith.constant 0 : i32
    %c0_i32_2 = arith.constant 0 : i32
    return %c0_i32, %c0_i32_0, %c0_i32_1 : i32, i32, i32
  }
  func.func @transform_7(%arg0: i32) -> (i32, i32, i32) {
    %c0_i32 = arith.constant 0 : i32
    %c0_i32_0 = arith.constant 0 : i32
    %c0_i32_1 = arith.constant 0 : i32
    %c0_i32_2 = arith.constant 0 : i32
    return %c0_i32, %c0_i32_0, %c0_i32_1 : i32, i32, i32
  }
  func.func @transform_8(%arg0: i32) -> (i32, i32, i32) {
    %c0_i32 = arith.constant 0 : i32
    %c0_i32_0 = arith.constant 0 : i32
    %c0_i32_1 = arith.constant 0 : i32
    %c0_i32_2 = arith.constant 0 : i32
    return %c0_i32, %c0_i32_0, %c0_i32_1 : i32, i32, i32
  }
  func.func @transform_9(%arg0: i32) -> (i32, i32) {
    %c0_i32 = arith.constant 0 : i32
    %c0_i32_0 = arith.constant 0 : i32
    %c0_i32_1 = arith.constant 0 : i32
    return %c0_i32, %c0_i32_0 : i32, i32
  }
  func.func @transform_10(%arg0: i32) -> (i32, i32) {
    %c0_i32 = arith.constant 0 : i32
    %c0_i32_0 = arith.constant 0 : i32
    %c0_i32_1 = arith.constant 0 : i32
    return %c0_i32, %c0_i32_0 : i32, i32
  }
  func.func @transform_11(%arg0: i32) -> (i32, i32) {
    %c0_i32 = arith.constant 0 : i32
    %c0_i32_0 = arith.constant 0 : i32
    return %arg0, %c0_i32 : i32, i32
  }
}

</mosaic_0001>

<bundles_post_ra>
// kernel: tpu_custom_call.1
= control target key start
LH: loop header
LB: loop body
LE: loop exit
PB: predicated region body
PF: predicated region fallthrough
CT: control target
= control target key end

     0   :  { %s615_s0 = inlined_call_operand.vmem [shape: f32[8,12], index: 0, kind: input, shape index: {}]   ;;  %s616_s1 = inlined_call_operand.vmem [shape: f32[8,4], index: 1, kind: input, shape index: {}]   ;;  %s617_s2 = inlined_call_operand.hbm [shape: bf16[12,128], index: 2, kind: input, shape index: {}]   ;;  %s618_s3 = inlined_call_operand.vmem [shape: bf16[4,128], index: 3, kind: input, shape index: {}]   ;;  %s619_s4 = inlined_call_operand.vmem [shape: f32[1,128], index: 4, kind: input, shape index: {}]   ;;  %s620_s5 = inlined_call_operand.hbm [shape: bf16[2,128,128], index: 5, kind: input, shape index: {}]   ;;  %s621_s6 = inlined_call_operand.vmem [shape: f32[2,1,128], index: 6, kind: input, shape index: {}]   ;;  %s622_s7 = inlined_call_operand.vmem [shape: f32[2,1,128], index: 7, kind: input, shape index: {}]   ;;  %s623_s8 = inlined_call_operand.vmem [shape: f32[2,1,128], index: 8, kind: input, shape index: {}]   ;;  %s624_s9 = inlined_call_operand.vmem [shape: f32[1,128], index: 9, kind: input, shape index: {}]   ;;  %s625_s10 = inlined_call_operand.<no memory space> [shape: f32[1,1], index: 10, kind: input, shape index: {}]   ;;  %s626_s11 = inlined_call_operand.hbm [shape: f32[8,128], index: 11, kind: output, shape index: {}]  }
   0x1   :  { %v16_v0 = vstv %s625_s10 }
   0x2   :  { %17 = vst [vmem:[#allocation2] sm:$0x1] %v16_v0 }
   0x3   :  { %18 = vsyncpa [#allocation4], 0 }
   0x4   :  { %19 = vsyncpa [#allocation7], 0 }
   0x5   :  { %20 = vsyncpa [#allocation5], 0  ;;  %s29_s8 = sshll.u32 %s617_s2, 4  ;;  %s516_s20 = smov [#allocation3]   ;;  %s30_s8 = int_to_ptr.hbm [resolvable:$true] %s29_s8 }
   0x6   :  { %s31_s21 = sshll.u32 %s516_s20, 4  ;;  %s46_s24 = sshll.u32 %s620_s5, 4  ;;  %s32_s21 = int_to_ptr.vmem [resolvable:$true] %s31_s21  ;;  %s47_s24 = int_to_ptr.hbm [resolvable:$true] %s46_s24 }
   0x7   :  { %s517_s25 = smov 64   ;;  %s518_s26 = smov 4  }
   0x8   :  { %37 = dma.hbm_to_vmem [thread:$0]  %s30_s8, 128, %s32_s21, [#allocation4], %s517_s25, %s517_s25, %s518_s26  }
   0x9   :  { %s519_s10 = smov [#allocation6]  }
   0xa   :  { %s48_s27 = sshll.u32 %s519_s10, 4  ;;  %s49_s27 = int_to_ptr.vmem [resolvable:$true] %s48_s27 }
   0xb   :  { %54 = dma.hbm_to_vmem [thread:$0]  %s47_s24, 2048, %s49_s27, [#allocation7], %s517_s25, %s517_s25, %s518_s26  }
   0xc   :  { %510 = dma.done.wait [#allocation4], 128  }
   0xd   :  { %511 = vsyncadd [#allocation4], 4294967168 }
   0xe   :  { %512 = dma.done.wait [#allocation7], 2048  }
   0xf   :  { %513 = vsyncadd [#allocation7], 4294965248  ;;  %vm85_vm0 = vcmask 1041408   ;;  %vm111_vm1 = vcmask 1045504   ;;  %v80_v1 = vld [vmem:[%s618_s3] sm:$0x3] }
  0x10   :  { %v341_v2 = vld [vmem:[#allocation3] sm:$0xf]  ;;  %v409_v3 = vld [vmem:[#allocation3] sm:$0x30]  ;;  %v87_v4 = vsel %vm85_vm0, %v80_v1, 0  ;;  %vm81_vm2 = vcmask 31744  }
  0x11   :  { %v342_v5 = vor.u32 %v409_v3, %v341_v2  ;;  %v78_v6 = vld [vmem:[%s616_s1] sm:$0xff]  ;;  %96 = vmatpush.bf16.msra.mxu0 %v87_v4  ;;  %vm107_vm3 = vcmask 97280   ;;  %v415_v13 = vld [vmem:[#allocation6 + $0x28] sm:$0xff]  ;;  %v414_v14 = vld [vmem:[#allocation6 + $0x20] sm:$0xff]  ;;  %v520_v49 = vmov 0   ;;  %s521_s17 = smov [#allocation8]  }
  0x12   :  { %v74_v7 = vld [vmem:[%s615_s0] sm:$0xff]  ;;  %v79_v9 = vpack.c.bf16 %v78_v6, %v78_v6  ;;  %v411_v17 = vld [vmem:[#allocation6 + $0x8] sm:$0xff]  ;;  %v410_v18 = vld [vmem:[#allocation6] sm:$0xff]  ;;  %432 = vset.pattern.permute.xlu0 %v520_v49  ;;  %s325_s18 = sshll.u32 %s521_s17, 4  ;;  %s327_s19 = sshll.u32 %s626_s11, 4  ;;  %s326_s18 = int_to_ptr.vmem [resolvable:$true] %s325_s18  ;;  %s328_s19 = int_to_ptr.hbm [resolvable:$true] %s327_s19 }
  0x13   :  { %v417_v8 = vld [vmem:[#allocation6 + $0x38] sm:$0xff]  ;;  %v113_v10 = vsel %vm111_vm1, %v342_v5, 0  ;;  %v75_v11 = vpack.c.bf16 %v74_v7, %v74_v7  ;;  %v416_v12 = vld [vmem:[#allocation6 + $0x30] sm:$0xff]  ;;  %v423_v21 = vld [vmem:[#allocation6 + $0x68] sm:$0xff] }
  0x14   :  { %203 = vmatpush.bf16.msra.mxu2 %v417_v8  ;;  %122 = vmatpush.bf16.msra.mxu1 %v113_v10  ;;  %v413_v15 = vld [vmem:[#allocation6 + $0x18] sm:$0xff]  ;;  %v412_v16 = vld [vmem:[#allocation6 + $0x10] sm:$0xff]  ;;  %v422_v22 = vld [vmem:[#allocation6 + $0x60] sm:$0xff] }
  0x15   :  { %338 = vmatmul.msk.bf16.vlgmr.msra.gmra.mxu0 %vm81_vm2, %v79_v9  ;;  %v425_v19 = vld [vmem:[#allocation6 + $0x78] sm:$0xff]  ;;  %v424_v20 = vld [vmem:[#allocation6 + $0x70] sm:$0xff]  ;;  %v419_v34 = vld [vmem:[#allocation6 + $0x48] sm:$0xff] }
  0x16   :  { %288 = vmatpush.bf16.msra.mxu3 %v425_v19  ;;  %v421_v23 = vld [vmem:[#allocation6 + $0x58] sm:$0xff]  ;;  %v420_v24 = vld [vmem:[#allocation6 + $0x50] sm:$0xff]  ;;  %v418_v35 = vld [vmem:[#allocation6 + $0x40] sm:$0xff] }
  0x17   :  { %343 = vmatmul.msk.bf16.vlgmr.msra.gmra.mxu1 %vm107_vm3, %v75_v11  ;;  %v433_v26 = vld [vmem:[%s619_s4] ss:$0 sm:$0xff]  ;;  %v435_v42 = vld [vmem:[%s621_s6 + $0x1] ss:$0 sm:$0xff] }
  0x18   :  { %204 = vmatpush.bf16.msra.mxu2 %v416_v12  ;;  %v434_v36 = vld [vmem:[%s621_s6] ss:$0 sm:$0xff] }
  0x19   :  { %v436_v45 = vld [vmem:[%s624_s9] ss:$0 sm:$0xff] }
  0x1a   :  { %289 = vmatpush.bf16.msra.mxu3 %v424_v20  ;;  %v437_v50 = vld [vmem:[#allocation2] ss:$0 sm:$0xff] }
  0x1c   :  { %205 = vmatpush.bf16.msra.mxu2 %v415_v13 }
  0x1e   :  { %290 = vmatpush.bf16.msra.mxu3 %v423_v21 }
  0x20   :  { %206 = vmatpush.bf16.msra.mxu2 %v414_v14 }
  0x22   :  { %291 = vmatpush.bf16.msra.mxu3 %v422_v22 }
  0x24   :  { %207 = vmatpush.bf16.msra.mxu2 %v413_v15 }
  0x26   :  { %292 = vmatpush.bf16.msra.mxu3 %v421_v23 }
  0x28   :  { %208 = vmatpush.bf16.msra.mxu2 %v412_v16 }
  0x2a   :  { %293 = vmatpush.bf16.msra.mxu3 %v420_v24 }
  0x2c   :  { %209 = vmatpush.bf16.msra.mxu2 %v411_v17 }
  0x2e   :  { %294 = vmatpush.bf16.msra.mxu3 %v419_v34 }
  0x30   :  { %210 = vmatpush.bf16.msra.mxu2 %v410_v18 }
  0x32   :  { %295 = vmatpush.bf16.msra.mxu3 %v418_v35 }
  0x92   :  { %v98_v25 = vpop.f32.mrf.mxu0 }
  0x94   :  { %v124_v27 = vpop.f32.mrf.mxu1 }
  0x95   :  { %v125_v28 = vadd.f32 %v124_v27, %v98_v25 }
  0x97   :  { %v132_v29 = vadd.f32 %v433_v26, %v125_v28 }
  0x99   :  { %v133_v30 = vmax.f32 %v132_v29, 0.0 }
  0x9a   :  { %v100_v31 = vpop.f32.mrf.mxu0 }
  0x9b   :  { %v134_v32 = vpack.c.bf16 %v133_v30, %v133_v30 }
  0x9c   :  { %v126_v33 = vpop.f32.mrf.mxu1 }
  0x9d   :  { %211 = vmatmul.bf16.vlgmr.msra.gmra.mxu2 %v134_v32 }
 0x120   :  { %v212_v37 = vpop.f32.mrf.mxu2 }
 0x121   :  { %v213_v38 = vadd.f32 %v434_v36, %v212_v37 }
 0x123   :  { %v216_v39 = vmax.f32 %v213_v38, 0.0 }
 0x125   :  { %v217_v40 = vpack.c.bf16 %v216_v39, %v216_v39 }
 0x127   :  { %296 = vmatmul.bf16.vlgmr.msra.gmra.mxu3 %v217_v40 }
 0x128   :  { %v214_v41 = vpop.f32.mrf.mxu2 }
 0x1aa   :  { %v297_v43 = vpop.f32.mrf.mxu3 }
 0x1ab   :  { %v298_v44 = vadd.f32 %v435_v42, %v297_v43 }
 0x1ad   :  { %v301_v46 = vmax.f32 %v298_v44, 0.0 }
 0x1af   :  { %v306_v47 = vmul.f32 %v436_v45, %v301_v46 }
 0x1b1   :  { %307 = vadd.xlane.f32.xlu0 %v306_v47 }
 0x1b2   :  { %v299_v48 = vpop.f32.mrf.mxu3 }
 0x224   :  { %v308_v51 = vpop.xlane.xlu0 %307 }
 0x225   :  { %v313_v52 = vadd.f32 %v437_v50, %v308_v51 }
 0x227   :  { %316 = vperm.xlu0 %432, %v313_v52  }
 0x299   :  { %v317_v53 = vpop.permute.xlu0 %316 }
 0x29a   :  { %319 = vst [vmem:[#allocation8] sm:$0xff] %v317_v53 }
 0x29b   :  { %330 = dma.vmem_to_hbm [thread:$0]  %s326_s18, 128, %s328_s19, [#allocation5]  }
 0x29c   :  { %514 = dma.done.wait [#allocation5], 128  }
 0x29d   :  { %515 = vsyncadd [#allocation5], 4294967168 }
 0x29e   :  { %335 = vsyncpa [#allocation4], 1 }
 0x29f   :  { %336 = vsyncpa [#allocation7], 1 }
 0x2a0   :  { %337 = vsyncpa [#allocation5], 1 }

</bundles_post_ra>
